<compile_context>
chip_gen: v7x
topology: tpu7x:2x2x1
jax: 0.10.0
libtpu: 0.0.40
codegen_flags: <defaults>
</compile_context>

<pallas_src>
import jax
import jax.numpy as jnp
from jax.experimental import pallas as pl
from jax.experimental.pallas import tpu as pltpu


def _round_up(x, m):
    return ((x + m - 1) // m) * m


def _sublane(itemsize):
    # dtype-native sublane multiple: 8 for f32, 16 for bf16, 32 for int8/fp8.
    return max(8, 32 // itemsize)


def _padded_bytes(rows, cols, itemsize):
    return _round_up(max(rows, 1), _sublane(itemsize)) * _round_up(cols, 128) * itemsize


def _vmem_capacity_bytes():
    try:
        return int(pltpu.get_tpu_info().vmem_capacity_bytes)
    except Exception:
        return 64 * 1024 * 1024  # conservative (v7x per-TensorCore)


def _choose_tile_rows(n_rows, per_row_bytes, itemsize, vmem_cap, resident_bytes):
    sub = _sublane(itemsize)
    if n_rows <= sub:
        return max(n_rows, 1)  # single full-dim block (always a legal block shape)
    # Pipeline budget (x tile + out tile, double-buffered): <= half of physical
    # VMEM, capped at 32 MiB — 512–1024-row tiles already reach ~85% of the HBM
    # roofline, so bigger tiles buy nothing.
    budget = min(vmem_cap // 2, 32 * 1024 * 1024) - 2 * resident_bytes
    budget = max(budget, 4 * 1024 * 1024)
    tile = (budget // 2) // per_row_bytes  # /2: double buffering
    tile = max(sub, (tile // sub) * sub)
    tile = min(tile, 32768)
    # Keep >= 4 grid steps when there is enough work so the "parallel" axis can
    # shard across v7x's two TensorCores and the pipeline overlaps DMA/compute.
    if n_rows >= 4 * sub:
        tile = min(tile, _round_up(pl.cdiv(n_rows, 4), sub))
    if tile >= n_rows:
        tile = n_rows  # single full-dim block
    return tile


def _vmem_limit_bytes(tile, in_cols, out_cols, itemsize, resident_bytes, vmem_cap):
    x_tile = _padded_bytes(tile, in_cols, itemsize)
    o_tile = _padded_bytes(tile, out_cols, itemsize)
    need = 2 * (x_tile + o_tile) + 2 * resident_bytes + (4 << 20)  # + internal scratch headroom
    return int(min(max(need, 16 << 20), vmem_cap))


def _rotation_kernel_packed(x_ref, w_ref, b_ref, s_ref, o_ref):
    # x_ref: (T, k*C) = (T, 128); w_ref: (128, 4k); b_ref: (1, 4k) f32;
    # s_ref: (4k, 4k) f32 group-sum spread matrix; o_ref: (T, 4k).
    quats = jnp.dot(x_ref[...], w_ref[...],
                    preferred_element_type=jnp.float32) + b_ref[...]
    # Grouped (per 4 lanes) sum of squares via a tiny MXU matmul against
    # kron(I_k, ones(4,4)) — keeps the reduce/broadcast off the lane-sparse VPU/XLU.
    sumsq = jnp.dot(quats * quats, s_ref[...], preferred_element_type=jnp.float32)
    o_ref[...] = (quats * jax.lax.rsqrt(sumsq)).astype(o_ref.dtype)


def _rotation_kernel_plain(x_ref, w_ref, b_ref, o_ref):
    # x_ref: (T, C); w_ref: (C, 4); b_ref: (1, 4) f32; o_ref: (T, 4).
    quats = jnp.dot(x_ref[...], w_ref[...],
                    preferred_element_type=jnp.float32) + b_ref[...]
    inv_norm = jax.lax.rsqrt(jnp.sum(quats * quats, axis=-1, keepdims=True))
    o_ref[...] = (quats * inv_norm).astype(o_ref.dtype)


def rotation_predictor(x, weight, bias):
    """x: (..., in_channels); weight: (4, in_channels) (PyTorch nn.Linear layout);
       bias: (4,). Returns (..., 4) unit quaternions in x.dtype."""
    in_channels = x.shape[-1]
    lead = x.shape[:-1]
    n = 1
    for d in lead:
        n *= d

    dtype = x.dtype
    itemsize = dtype.itemsize
    x2 = x.reshape(n, in_channels)
    w_t = weight.T.astype(dtype)        # (C, 4); params follow the activation dtype
    b_f32 = bias.astype(jnp.float32)
    vmem_cap = _vmem_capacity_bytes()

    # Small-C row packing: k rows per 128-lane row (lane-dense input & output).
    k = 128 // in_channels if (in_channels <= 64 and 128 % in_channels == 0) else 1
    use_packed = (k > 1) and (n > 0) and (n % k == 0)

    if use_packed:
        n_rows, in_cols, out_cols = n // k, k * in_channels, 4 * k
        x_in = x2.reshape(n_rows, in_cols)                         # free (row-major)
        w_in = jnp.kron(jnp.eye(k, dtype=dtype), w_t)              # (128, 4k) block-diag
        b_in = jnp.tile(b_f32, k).reshape(1, out_cols)             # (1, 4k)
        spread = jnp.kron(jnp.eye(k, dtype=jnp.float32),
                          jnp.ones((4, 4), jnp.float32))           # (4k, 4k)
        resident = (_padded_bytes(in_cols, out_cols, itemsize)
                    + _padded_bytes(1, out_cols, 4)
                    + _padded_bytes(out_cols, out_cols, 4))
        per_row = (_round_up(in_cols, 128) * itemsize
                   + _round_up(out_cols, 128) * itemsize)
        tile = _choose_tile_rows(n_rows, per_row, itemsize, vmem_cap, resident)
        grid = (pl.cdiv(n_rows, tile),)
        vmem_limit = _vmem_limit_bytes(tile, in_cols, out_cols, itemsize,
                                       resident, vmem_cap)
        out = pl.pallas_call(
            _rotation_kernel_packed,
            out_shape=jax.ShapeDtypeStruct((n_rows, out_cols), dtype),
            grid_spec=pltpu.PrefetchScalarGridSpec(
                num_scalar_prefetch=0,
                grid=grid,
                in_specs=[
                    pl.BlockSpec((tile, in_cols), lambda i: (i, 0)),
                    pl.BlockSpec((in_cols, out_cols), lambda i: (0, 0)),    # resident
                    pl.BlockSpec((1, out_cols), lambda i: (0, 0)),          # resident
                    pl.BlockSpec((out_cols, out_cols), lambda i: (0, 0)),   # resident
                ],
                out_specs=pl.BlockSpec((tile, out_cols), lambda i: (i, 0)),
            ),
            compiler_params=pltpu.CompilerParams(
                dimension_semantics=("parallel",),
                vmem_limit_bytes=vmem_limit),
        )(x_in, w_in, b_in, spread)
        out = out.reshape(n, 4)                                    # free (row-major)
    else:
        n_rows, in_cols, out_cols = n, in_channels, 4
        b_in = b_f32.reshape(1, 4)
        resident = (_padded_bytes(in_cols, out_cols, itemsize)
                    + _padded_bytes(1, out_cols, 4))
        per_row = (_round_up(in_cols, 128) * itemsize
                   + _round_up(out_cols, 128) * itemsize)
        tile = _choose_tile_rows(n_rows, per_row, itemsize, vmem_cap, resident)
        grid = (pl.cdiv(n_rows, tile),)
        vmem_limit = _vmem_limit_bytes(tile, in_cols, out_cols, itemsize,
                                       resident, vmem_cap)
        out = pl.pallas_call(
            _rotation_kernel_plain,
            out_shape=jax.ShapeDtypeStruct((n_rows, out_cols), dtype),
            grid_spec=pltpu.PrefetchScalarGridSpec(
                num_scalar_prefetch=0,
                grid=grid,
                in_specs=[
                    pl.BlockSpec((tile, in_cols), lambda i: (i, 0)),
                    pl.BlockSpec((in_cols, out_cols), lambda i: (0, 0)),    # resident
                    pl.BlockSpec((1, out_cols), lambda i: (0, 0)),          # resident
                ],
                out_specs=pl.BlockSpec((tile, out_cols), lambda i: (i, 0)),
            ),
            compiler_params=pltpu.CompilerParams(
                dimension_semantics=("parallel",),
                vmem_limit_bytes=vmem_limit),
        )(x2, w_t, b_in)

    return out.reshape(*lead, 4)


def _reference(x, weight, bias):
    quats = x @ weight.T + bias
    return quats / jnp.linalg.norm(quats, ord=2, axis=-1, keepdims=True)


if __name__ == "__main__":
    in_channels = 32
    key = jax.random.PRNGKey(0)
    kx, kw, kb, kx2 = jax.random.split(key, 4)

    bound = 1.0 / (in_channels ** 0.5)
    weight = jax.random.uniform(kw, (4, in_channels), dtype=jnp.float32,
                                minval=-bound, maxval=bound)
    bias = jax.random.uniform(kb, (4,), dtype=jnp.float32,
                              minval=-bound, maxval=bound)

    # Case 1: exercises the lane-dense packed path (n = 16, k = 4).
    batch, seq = 2, 8
    x = jax.random.normal(kx, (batch, seq, in_channels), dtype=jnp.float32)
    rotations = jax.block_until_ready(rotation_predictor(x, weight, bias))
    ref = _reference(x, weight, bias)
    assert rotations.shape == (batch, seq, 4)
    assert jnp.allclose(rotations, ref, atol=1e-5, rtol=1e-5)

    # Case 2: n = 15 (not a multiple of k) exercises the plain fallback path and
    # the no-pad ragged/full-dim block handling.
    x_b = jax.random.normal(kx2, (3, 5, in_channels), dtype=jnp.float32)
    rotations_b = jax.block_until_ready(rotation_predictor(x_b, weight, bias))
    ref_b = _reference(x_b, weight, bias)
    assert rotations_b.shape == (3, 5, 4)
    assert jnp.allclose(rotations_b, ref_b, atol=1e-5, rtol=1e-5)

    print("KERNEL_OK")
</pallas_src>

<mosaic_0001>
module attributes {stable_mosaic.version = 11 : i64} {
  func.func @_rotation_kernel_packed(%arg0: i32, %arg1: memref<4x128xf32, #tpu.memory_space<vmem>>, %arg2: memref<128x16xf32, #tpu.memory_space<vmem>>, %arg3: memref<1x16xf32, #tpu.memory_space<vmem>>, %arg4: memref<16x16xf32, #tpu.memory_space<vmem>>, %arg5: memref<4x16xf32, #tpu.memory_space<vmem>>) attributes {dimension_semantics = [#tpu.dimension_semantics<parallel>], iteration_bounds = array<i64: 1>, scalar_prefetch = 0 : i64, scratch_operands = 0 : i64, tpu.core_type = #tpu.core_type<tc>, window_params = [{transform_indices = @transform_0, window_bounds = array<i64: 4, 128>}, {pipeline_mode = #tpu.pipeline_mode<synchronous>, transform_indices = @transform_1, window_bounds = array<i64: 128, 16>}, {pipeline_mode = #tpu.pipeline_mode<synchronous>, transform_indices = @transform_2, window_bounds = array<i64: 1, 16>}, {pipeline_mode = #tpu.pipeline_mode<synchronous>, transform_indices = @transform_3, window_bounds = array<i64: 16, 16>}, {transform_indices = @transform_4, window_bounds = array<i64: 4, 16>}]} {
    %c0 = arith.constant 0 : index
    %c0_0 = arith.constant 0 : index
    %0 = vector.load %arg1[%c0, %c0_0] : memref<4x128xf32, #tpu.memory_space<vmem>>, vector<4x128xf32>
    %c0_1 = arith.constant 0 : index
    %c0_2 = arith.constant 0 : index
    %1 = vector.load %arg2[%c0_1, %c0_2] : memref<128x16xf32, #tpu.memory_space<vmem>>, vector<128x16xf32>
    %cst = arith.constant dense<0.000000e+00> : vector<4x16xf32>
    %2 = tpu.matmul %0, %1, %cst {dimension_numbers = #tpu.dot_dimension_numbers<[1], [0], [0], [1], [0, 0, 1, 1], [], []>} : vector<4x128xf32>, vector<128x16xf32>, vector<4x16xf32> -> vector<4x16xf32>
    %c0_3 = arith.constant 0 : index
    %c0_4 = arith.constant 0 : index
    %3 = vector.load %arg3[%c0_3, %c0_4] : memref<1x16xf32, #tpu.memory_space<vmem>>, vector<1x16xf32>
    %4 = vector.broadcast %3 : vector<1x16xf32> to vector<4x16xf32>
    %5 = arith.addf %2, %4 : vector<4x16xf32>
    %6 = arith.mulf %5, %5 : vector<4x16xf32>
    %c0_5 = arith.constant 0 : index
    %c0_6 = arith.constant 0 : index
    %7 = vector.load %arg4[%c0_5, %c0_6] : memref<16x16xf32, #tpu.memory_space<vmem>>, vector<16x16xf32>
    %cst_7 = arith.constant dense<0.000000e+00> : vector<4x16xf32>
    %8 = tpu.matmul %6, %7, %cst_7 {dimension_numbers = #tpu.dot_dimension_numbers<[1], [0], [0], [1], [0, 0, 1, 1], [], []>} : vector<4x16xf32>, vector<16x16xf32>, vector<4x16xf32> -> vector<4x16xf32>
    %9 = math.rsqrt %8 : vector<4x16xf32>
    %10 = arith.mulf %5, %9 : vector<4x16xf32>
    %c0_8 = arith.constant 0 : index
    %c0_9 = arith.constant 0 : index
    %11 = vector.load %arg5[%c0_8, %c0_9] : memref<4x16xf32, #tpu.memory_space<vmem>>, vector<4x16xf32>
    tpu.vector_store %arg5[%c0_8, %c0_9], %10 {strides = array<i32>} : memref<4x16xf32, #tpu.memory_space<vmem>>, vector<4x16xf32>,
    return
  }
  func.func @transform_0(%arg0: i32) -> (i32, i32) {
    %c0_i32 = arith.constant 0 : i32
    %c0_i32_0 = arith.constant 0 : i32
    return %arg0, %c0_i32 : i32, i32
  }
  func.func @transform_1(%arg0: i32) -> (i32, i32) {
    %c0_i32 = arith.constant 0 : i32
    %c0_i32_0 = arith.constant 0 : i32
    %c0_i32_1 = arith.constant 0 : i32
    return %c0_i32, %c0_i32_0 : i32, i32
  }
  func.func @transform_2(%arg0: i32) -> (i32, i32) {
    %c0_i32 = arith.constant 0 : i32
    %c0_i32_0 = arith.constant 0 : i32
    %c0_i32_1 = arith.constant 0 : i32
    return %c0_i32, %c0_i32_0 : i32, i32
  }
  func.func @transform_3(%arg0: i32) -> (i32, i32) {
    %c0_i32 = arith.constant 0 : i32
    %c0_i32_0 = arith.constant 0 : i32
    %c0_i32_1 = arith.constant 0 : i32
    return %c0_i32, %c0_i32_0 : i32, i32
  }
  func.func @transform_4(%arg0: i32) -> (i32, i32) {
    %c0_i32 = arith.constant 0 : i32
    %c0_i32_0 = arith.constant 0 : i32
    return %arg0, %c0_i32 : i32, i32
  }
}

</mosaic_0001>

<bundles_post_ra>
// kernel: tpu_custom_call.1
= control target key start
LH: loop header
LB: loop body
LE: loop exit
PB: predicated region body
PF: predicated region fallthrough
CT: control target
= control target key end

     0   :  { %v328_v3 = vmov 0.0|0.0   ;;  %vm329_vm0 = vmmov 0   ;;  %v330_v6 = vmov 0.0   ;;  %s429_s0 = inlined_call_operand.vmem [shape: f32[4,128], index: 0, kind: input, shape index: {}]   ;;  %s430_s1 = inlined_call_operand.vmem [shape: f32[128,16], index: 1, kind: input, shape index: {}]   ;;  %s431_s2 = inlined_call_operand.vmem [shape: f32[1,16], index: 2, kind: input, shape index: {}]   ;;  %s432_s3 = inlined_call_operand.vmem [shape: f32[16,16], index: 3, kind: input, shape index: {}]   ;;  %s433_s4 = inlined_call_operand.hbm [shape: f32[4,16], index: 4, kind: output, shape index: {}]  }
   0x1   :  { %v19_v0 = vld [vmem:[%s430_s1] sm:$0xff]  ;;  %v20_v1 = vld [vmem:[%s430_s1 + $0x8] sm:$0xff]  ;;  %v21_v2 = vld [vmem:[%s430_s1 + $0x10] sm:$0xff]  ;;  %271 = vmatprep.subr.bf16.mxu0 %v328_v3  ;;  %261 = vmatprep.mubr.msk.f32.mxu0 %vm329_vm0, %v330_v6 }
   0x2   :  { %v272_v4 = vpack.c.bf16 %v20_v1, %v19_v0  ;;  %v22_v5 = vld [vmem:[%s430_s1 + $0x18] sm:$0xff]  ;;  %295 = vmatprep.subr.bf16.mxu1 %v328_v3  ;;  %268 = vmatprep.mubr.msk.f32.mxu1 %vm329_vm0, %v330_v6  ;;  %v23_v8 = vld [vmem:[%s430_s1 + $0x20] sm:$0xff]  ;;  %v24_v9 = vld [vmem:[%s430_s1 + $0x28] sm:$0xff] }
   0x3   :  { %v275_v7 = vpack.c.bf16 %v22_v5, %v21_v2 }
   0x4   :  { %273 = vmatpush3.bf16.msra.mxu0 %v272_v4 }
   0x5   :  { %274 = vmatprep.subr.bf16.mxu0 %v328_v3 }
   0x6   :  { %9 = vsyncpa [#allocation3], 0  ;;  %v278_v10 = vpack.c.bf16 %v24_v9, %v23_v8  ;;  %v25_v11 = vld [vmem:[%s430_s1 + $0x30] sm:$0xff]  ;;  %v26_v12 = vld [vmem:[%s430_s1 + $0x38] sm:$0xff]  ;;  %vm115_vm1 = vcmask 130048   ;;  %vm191_vm2 = vcmask 125952  }
   0x7   :  { %v281_v13 = vpack.c.bf16 %v26_v12, %v25_v11  ;;  %v27_v14 = vld [vmem:[%s430_s1 + $0x40] sm:$0xff]  ;;  %v28_v15 = vld [vmem:[%s430_s1 + $0x48] sm:$0xff]  ;;  %v29_v17 = vld [vmem:[%s430_s1 + $0x50] sm:$0xff] }
   0x8   :  { %276 = vmatpush3.bf16.msra.mxu0 %v275_v7  ;;  %v284_v16 = vpack.c.bf16 %v28_v15, %v27_v14  ;;  %v30_v18 = vld [vmem:[%s430_s1 + $0x58] sm:$0xff]  ;;  %v31_v20 = vld [vmem:[%s430_s1 + $0x60] sm:$0xff]  ;;  %v32_v21 = vld [vmem:[%s430_s1 + $0x68] sm:$0xff] }
   0x9   :  { %277 = vmatprep.subr.bf16.mxu0 %v328_v3  ;;  %v287_v19 = vpack.c.bf16 %v30_v18, %v29_v17  ;;  %v290_v22 = vpack.c.bf16 %v32_v21, %v31_v20  ;;  %v33_v23 = vld [vmem:[%s430_s1 + $0x70] sm:$0xff]  ;;  %v34_v24 = vld [vmem:[%s430_s1 + $0x78] sm:$0xff]  ;;  %v18_v26 = vld [vmem:[%s429_s0] sm:$0xf]  ;;  %s331_s0 = smov [#allocation2]  }
   0xa   :  { %v293_v25 = vpack.c.bf16 %v34_v24, %v33_v23  ;;  %v113_v27 = vld [vmem:[%s432_s3] sm:$0xff]  ;;  %v114_v28 = vld [vmem:[%s432_s3 + $0x8] sm:$0xff]  ;;  %s199_s28 = sshll.u32 %s331_s0, 4  ;;  %s200_s28 = int_to_ptr.vmem [resolvable:$true] %s199_s28 }
   0xb   :  { %v296_v29 = vpack.c.bf16 %v114_v28, %v113_v27  ;;  %v207_v30 = vld [vmem:[%s431_s2] ss:$0 sm:$0xff]  ;;  %s304_s3 = scalar_lea.vmem %s200_s28, 64  ;;  %p309_p1 = scmp.lt.s32.totalorder %s200_s28, %s200_s28 }
   0xc   :  { %279 = vmatpush3.bf16.msra.mxu0 %v278_v10  ;;  %p305_p0 = scmp.ne.s32.totalorder %s200_s28, %s304_s3  ;;  %p310_p2 = scmp.lt.s32.totalorder %s304_s3, %s304_s3 }
   0xd   :  { %280 = vmatprep.subr.bf16.mxu0 %v328_v3  ;;  %297 = vmatpush3.bf16.msra.mxu1 %v296_v29 }
   0xe   :  { %p311_p3 = por %p310_p2, %p309_p1 }
  0x10   :  { %282 = vmatpush3.bf16.msra.mxu0 %v281_v13  ;;  %p312_p4 = pnand %p311_p3, %p305_p0 }
  0x11   :  { %283 = vmatprep.subr.bf16.mxu0 %v328_v3 }
  0x14   :  { %285 = vmatpush3.bf16.msra.mxu0 %v284_v16 }
  0x15   :  { %286 = vmatprep.subr.bf16.mxu0 %v328_v3 }
  0x18   :  { %288 = vmatpush3.bf16.msra.mxu0 %v287_v19 }
  0x19   :  { %289 = vmatprep.subr.bf16.mxu0 %v328_v3 }
  0x1c   :  { %291 = vmatpush3.bf16.msra.mxu0 %v290_v22 }
  0x1d   :  { %292 = vmatprep.subr.bf16.mxu0 %v328_v3 }
  0x20   :  { %294 = vmatpush3.bf16.msra.mxu0 %v293_v25 }
  0x23   :  { %262 = vmatmul.mubr.f32.vlgmr.msra.gmra.mrb[0].mxu0 %v18_v26 }
  0xf6   :  { %v108_v31 = vpop.f32.mrb[0].mxu0 }
  0xf7   :  { %v109_v32 = vadd.f32 %v207_v30, %v108_v31  ;;  %v263_v33 = vpop.f32.mrb[1].mxu0 }
  0xf9   :  { %v112_v34 = vmul.f32 %v109_v32, %v109_v32 }
  0xfb   :  { %269 = vmatmul.mubr.msk.f32.vlgmr.msra.gmra.mrb[0].mxu1 %vm115_vm1, %v112_v34 }
 0x1ce   :  { %v185_v35 = vpop.f32.mrb[0].mxu1 }
 0x1cf   :  { %302 = vrsqrt.f32 %v185_v35  ;;  %v270_v36 = vpop.f32.mrb[1].mxu1 }
 0x1d9   :  { %v303_v37 = vpop.eup %302 }
 0x1da   :  { %v190_v38 = vmul.f32 %v303_v37, %v109_v32 }
 0x1dc   :  { %192 = vst.msk [vmem:[#allocation2] sm:$0xf] %vm191_vm2, %v190_v38 }
 0x1dd   :  { %315 = shalt.err (!%p312_p4)
}
 0x1de   :  { %s316_s30 = scalar_lea.hbm %s433_s4, 64 }
 0x1df   :  { %p317_p5 = scmp.ne.s32.totalorder %s433_s4, %s316_s30  ;;  %p320_p6 = scmp.lt.u32.totalorder %s316_s30, %s433_s4 }
 0x1e1   :  { %p322_p7 = pnand %p320_p6, %p317_p5 }
 0x1e3   :  { %325 = shalt.err (!%p322_p7)
}
 0x1e4   :  { %202 = dma.vmem_to_hbm [thread:$0]  %s200_s28, 64, %s433_s4, [#allocation3]  }
 0x1e5   :  { %326 = dma.done.wait [#allocation3], 64  }
 0x1e6   :  { %327 = vsyncadd [#allocation3], 4294967232 }
 0x1e7   :  { %206 = vsyncpa [#allocation3], 1 }

</bundles_post_ra>
